<compile_context>
chip_gen: v7x
topology: tpu7x:2x2x1
jax: 0.10.0
libtpu: 0.0.40
codegen_flags: <defaults>
</compile_context>

<pallas_src>
import math

import jax
import jax.numpy as jnp
from jax.experimental import pallas as pl
from jax.experimental.pallas import tpu as pltpu


def _round_up(x, m):
    return ((x + m - 1) // m) * m


# ----------------------------------------------------------------------------
# Kernel body: whole 2-layer gated MLP in two MXU matmuls.
# ----------------------------------------------------------------------------
def _gate_nn_body(x1_ref, x2_ref, w1_ref, b1_ref, w2_ref, b2_ref, out_ref):
    H = out_ref.shape[-1]

    # ---- layer 1: one fused dot -> [TB, 2H], cols [:H]=tanh, [H:]=sigmoid ----
    x1 = x1_ref[...]                                           # bf16 [TB, H+I1]
    pre1 = (jnp.dot(x1, w1_ref[...], preferred_element_type=jnp.float32)
            + b1_ref[...])                                     # f32 [TB, 2H]
    h = jnp.tanh(pre1[:, :H]) * jax.nn.sigmoid(pre1[:, H:])    # f32 epilogue

    # TODO(synk): nn.Dropout(p=0.4) between the layers is identity (eval mode).

    # Cast back to MXU input dtype once before the layer-2 dot.
    h_c = h.astype(w2_ref.dtype)                               # bf16 [TB, H]
    if x2_ref is None:                       # GateNN(input2_size=0) path
        x2cat = h_c
    else:                                    # concat(h, input2) along lanes
        x2cat = jnp.concatenate([h_c, x2_ref[...]], axis=-1)

    # ---- layer 2: second fused dot -> [TB, 2H] -------------------------------
    pre2 = (jnp.dot(x2cat, w2_ref[...], preferred_element_type=jnp.float32)
            + b2_ref[...])
    out_ref[...] = (jnp.tanh(pre2[:, :H])
                    * jax.nn.sigmoid(pre2[:, H:])).astype(out_ref.dtype)


def _gate_nn_kernel_with_x2(x1_ref, x2_ref, w1_ref, b1_ref, w2_ref, b2_ref, out_ref):
    _gate_nn_body(x1_ref, x2_ref, w1_ref, b1_ref, w2_ref, b2_ref, out_ref)


def _gate_nn_kernel_no_x2(x1_ref, w1_ref, b1_ref, w2_ref, b2_ref, out_ref):
    _gate_nn_body(x1_ref, None, w1_ref, b1_ref, w2_ref, b2_ref, out_ref)


# ----------------------------------------------------------------------------
# Wrapper: batch grid, resident weights, bf16 operands / f32 output.
# ----------------------------------------------------------------------------
def gate_nn_forward(x1cat, params, hidden_size, x2=None, *,
                    batch_tile=512, compute_dtype=jnp.bfloat16):
    """x1cat = cat(hidden, input1); x2 = input2 or None. Returns [B, H] f32."""
    B, K1 = x1cat.shape
    H = hidden_size
    w1, b1, w2, b2 = params["w1"], params["b1"], params["w2"], params["b2"]

    # Batch tile: multiple of 8 sublanes; pad B up to a multiple of TB.
    TB = min(batch_tile, _round_up(B, 8))
    Bp = _round_up(B, TB)
    grid = (Bp // TB,)

    def pad_b(a):
        return a if a.shape[0] == Bp else jnp.pad(a, ((0, Bp - a.shape[0]), (0, 0)))

    args = [pad_b(x1cat).astype(compute_dtype)]
    in_specs = [pl.BlockSpec((TB, K1), lambda b: (b, 0))]

    if x2 is not None:
        I2 = x2.shape[-1]
        args.append(pad_b(x2).astype(compute_dtype))
        in_specs.append(pl.BlockSpec((TB, I2), lambda b: (b, 0)))
        kernel = _gate_nn_kernel_with_x2
    else:
        kernel = _gate_nn_kernel_no_x2

    # Weights/biases: constant block index -> fetched once, VMEM-resident.
    def resident(a):
        return pl.BlockSpec(a.shape, lambda b: (0, 0))

    args += [w1.astype(compute_dtype), b1.astype(jnp.float32),
             w2.astype(compute_dtype), b2.astype(jnp.float32)]
    in_specs += [resident(w1), resident(b1), resident(w2), resident(b2)]

    # NOTE: out block is [TB, H]; for H < 128 the store is masked.  A
    # (TB*H/128, 128) lane-dense repack was deliberately skipped to avoid an
    # in-kernel relayout; lane-dense automatically when H is a multiple of 128.
    out = pl.pallas_call(
        kernel,
        out_shape=jax.ShapeDtypeStruct((Bp, H), jnp.float32),
        grid=grid,
        in_specs=in_specs,
        out_specs=pl.BlockSpec((TB, H), lambda b: (b, 0)),
        compiler_params=pltpu.CompilerParams(
            dimension_semantics=("parallel",)),
    )(*args)
    return out[:B]


# ----------------------------------------------------------------------------
# DecomposeModel-level wrappers (dropouts are identity in eval mode).
# ----------------------------------------------------------------------------
# TODO(synk): DecomposeModel's per-sample node_stack/tree_stack bookkeeping is
# host-side Python control flow with data-dependent branching; only the GateNN
# compute (l_decompose / r_decompose) is expressed as Pallas kernels here.
def l_decompose_forward(node_hidden, node_context, label_embedding, params, H):
    # l_input = cat(node_context, label_embedding); GateNN concats hidden in front.
    x1 = jnp.concatenate([node_hidden, node_context, label_embedding], axis=-1)
    return gate_nn_forward(x1, params, H, x2=None)


def r_decompose_forward(node_hidden, node_context, label_embedding,
                        left_embedding, params, H):
    x1 = jnp.concatenate([node_hidden, node_context, label_embedding], axis=-1)
    return gate_nn_forward(x1, params, H, x2=left_embedding)


# ----------------------------------------------------------------------------
# Params / reference
# ----------------------------------------------------------------------------
def init_gate_nn_params(key, hidden_size, input1_size, input2_size):
    """Packed params: W = [W_tanh | W_sigmoid] as (fan_in, 2H); b as (1, 2H)."""
    H, I1, I2 = hidden_size, input1_size, input2_size
    ks = jax.random.split(key, 4)

    def lin_w(k, fan_in, fan_out):
        s = 1.0 / math.sqrt(fan_in)
        return jax.random.uniform(k, (fan_in, fan_out), jnp.float32, -s, s)

    def lin_b(k, fan_in, fan_out):
        s = 1.0 / math.sqrt(fan_in)
        return jax.random.uniform(k, (1, fan_out), jnp.float32, -s, s)

    return {
        "w1": lin_w(ks[0], H + I1, 2 * H), "b1": lin_b(ks[1], H + I1, 2 * H),
        "w2": lin_w(ks[2], H + I2, 2 * H), "b2": lin_b(ks[3], H + I2, 2 * H),
    }


def gate_nn_reference(x1cat, params, H, x2=None):
    """Pure-JAX f32 mirror of GateNN forward (eval mode)."""
    pre1 = x1cat @ params["w1"] + params["b1"]
    h = jnp.tanh(pre1[:, :H]) * jax.nn.sigmoid(pre1[:, H:])
    x2cat = h if x2 is None else jnp.concatenate([h, x2], axis=-1)
    pre2 = x2cat @ params["w2"] + params["b2"]
    return jnp.tanh(pre2[:, :H]) * jax.nn.sigmoid(pre2[:, H:])


if __name__ == "__main__":
    B, H = 8, 32
    key = jax.random.PRNGKey(0)
    k_nh, k_nc, k_le, k_lft, k_lp, k_rp = jax.random.split(key, 6)

    node_hidden = jax.random.normal(k_nh, (B, H), jnp.float32)
    node_context = jax.random.normal(k_nc, (B, H), jnp.float32)
    label_embedding = jax.random.normal(k_le, (B, H), jnp.float32)
    left_embedding = jax.random.normal(k_lft, (B, H), jnp.float32)

    # DecomposeModel: l_decompose = GateNN(H, 2H, 0), r_decompose = GateNN(H, 2H, H)
    l_params = init_gate_nn_params(k_lp, H, 2 * H, 0)
    r_params = init_gate_nn_params(k_rp, H, 2 * H, H)

    l_out = l_decompose_forward(node_hidden, node_context, label_embedding,
                                l_params, H)
    r_out = r_decompose_forward(node_hidden, node_context, label_embedding,
                                left_embedding, r_params, H)
    l_out, r_out = jax.block_until_ready((l_out, r_out))

    x1 = jnp.concatenate([node_hidden, node_context, label_embedding], axis=-1)
    l_ref = gate_nn_reference(x1, l_params, H, x2=None)
    r_ref = gate_nn_reference(x1, r_params, H, x2=left_embedding)

    assert l_out.shape == (B, H) and r_out.shape == (B, H)
    # bf16 MXU operands vs. f32 reference -> loosened tolerance.
    assert jnp.allclose(l_out, l_ref, atol=3e-2, rtol=3e-2)
    assert jnp.allclose(r_out, r_ref, atol=3e-2, rtol=3e-2)

    print("KERNEL_OK")
</pallas_src>

<mosaic_0001>
module attributes {stable_mosaic.version = 11 : i64} {
  func.func @_gate_nn_kernel_no_x2(%arg0: i32, %arg1: memref<8x96xbf16, #tpu.memory_space<vmem>>, %arg2: memref<96x64xbf16, #tpu.memory_space<vmem>>, %arg3: memref<1x64xf32, #tpu.memory_space<vmem>>, %arg4: memref<32x64xbf16, #tpu.memory_space<vmem>>, %arg5: memref<1x64xf32, #tpu.memory_space<vmem>>, %arg6: memref<8x32xf32, #tpu.memory_space<vmem>>) attributes {dimension_semantics = [#tpu.dimension_semantics<parallel>], iteration_bounds = array<i64: 1>, scalar_prefetch = 0 : i64, scratch_operands = 0 : i64, tpu.core_type = #tpu.core_type<tc>, window_params = [{transform_indices = @transform_0, window_bounds = array<i64: 8, 96>}, {pipeline_mode = #tpu.pipeline_mode<synchronous>, transform_indices = @transform_1, window_bounds = array<i64: 96, 64>}, {pipeline_mode = #tpu.pipeline_mode<synchronous>, transform_indices = @transform_2, window_bounds = array<i64: 1, 64>}, {pipeline_mode = #tpu.pipeline_mode<synchronous>, transform_indices = @transform_3, window_bounds = array<i64: 32, 64>}, {pipeline_mode = #tpu.pipeline_mode<synchronous>, transform_indices = @transform_4, window_bounds = array<i64: 1, 64>}, {transform_indices = @transform_5, window_bounds = array<i64: 8, 32>}]} {
    %c0 = arith.constant 0 : index
    %c0_0 = arith.constant 0 : index
    %0 = vector.load %arg1[%c0, %c0_0] : memref<8x96xbf16, #tpu.memory_space<vmem>>, vector<8x96xbf16>
    %c0_1 = arith.constant 0 : index
    %c0_2 = arith.constant 0 : index
    %1 = vector.load %arg2[%c0_1, %c0_2] : memref<96x64xbf16, #tpu.memory_space<vmem>>, vector<96x64xbf16>
    %cst = arith.constant dense<0.000000e+00> : vector<8x64xf32>
    %2 = tpu.matmul %0, %1, %cst {dimension_numbers = #tpu.dot_dimension_numbers<[1], [0], [0], [1], [0, 0, 1, 1], [], []>} : vector<8x96xbf16>, vector<96x64xbf16>, vector<8x64xf32> -> vector<8x64xf32>
    %c0_3 = arith.constant 0 : index
    %c0_4 = arith.constant 0 : index
    %3 = vector.load %arg3[%c0_3, %c0_4] : memref<1x64xf32, #tpu.memory_space<vmem>>, vector<1x64xf32>
    %4 = vector.broadcast %3 : vector<1x64xf32> to vector<8x64xf32>
    %5 = arith.addf %2, %4 : vector<8x64xf32>
    %6 = vector.extract_strided_slice %5 {offsets = [0, 0], sizes = [8, 32], strides = [1, 1]} : vector<8x64xf32> to vector<8x32xf32>
    %7 = math.tanh %6 : vector<8x32xf32>
    %8 = vector.extract_strided_slice %5 {offsets = [0, 32], sizes = [8, 32], strides = [1, 1]} : vector<8x64xf32> to vector<8x32xf32>
    %9 = arith.negf %8 : vector<8x32xf32>
    %10 = math.exp %9 : vector<8x32xf32>
    %cst_5 = arith.constant 1.000000e+00 : f32
    %11 = vector.broadcast %cst_5 : f32 to vector<8x32xf32>
    %12 = arith.addf %11, %10 : vector<8x32xf32>
    %13 = arith.divf %11, %12 : vector<8x32xf32>
    %14 = arith.mulf %7, %13 : vector<8x32xf32>
    %15 = arith.truncf %14 : vector<8x32xf32> to vector<8x32xbf16>
    %c0_6 = arith.constant 0 : index
    %c0_7 = arith.constant 0 : index
    %16 = vector.load %arg4[%c0_6, %c0_7] : memref<32x64xbf16, #tpu.memory_space<vmem>>, vector<32x64xbf16>
    %cst_8 = arith.constant dense<0.000000e+00> : vector<8x64xf32>
    %17 = tpu.matmul %15, %16, %cst_8 {dimension_numbers = #tpu.dot_dimension_numbers<[1], [0], [0], [1], [0, 0, 1, 1], [], []>} : vector<8x32xbf16>, vector<32x64xbf16>, vector<8x64xf32> -> vector<8x64xf32>
    %c0_9 = arith.constant 0 : index
    %c0_10 = arith.constant 0 : index
    %18 = vector.load %arg5[%c0_9, %c0_10] : memref<1x64xf32, #tpu.memory_space<vmem>>, vector<1x64xf32>
    %19 = vector.broadcast %18 : vector<1x64xf32> to vector<8x64xf32>
    %20 = arith.addf %17, %19 : vector<8x64xf32>
    %21 = vector.extract_strided_slice %20 {offsets = [0, 0], sizes = [8, 32], strides = [1, 1]} : vector<8x64xf32> to vector<8x32xf32>
    %22 = math.tanh %21 : vector<8x32xf32>
    %23 = vector.extract_strided_slice %20 {offsets = [0, 32], sizes = [8, 32], strides = [1, 1]} : vector<8x64xf32> to vector<8x32xf32>
    %24 = arith.negf %23 : vector<8x32xf32>
    %25 = math.exp %24 : vector<8x32xf32>
    %cst_11 = arith.constant 1.000000e+00 : f32
    %26 = vector.broadcast %cst_11 : f32 to vector<8x32xf32>
    %27 = arith.addf %26, %25 : vector<8x32xf32>
    %28 = arith.divf %26, %27 : vector<8x32xf32>
    %29 = arith.mulf %22, %28 : vector<8x32xf32>
    %c0_12 = arith.constant 0 : index
    %c0_13 = arith.constant 0 : index
    %30 = vector.load %arg6[%c0_12, %c0_13] : memref<8x32xf32, #tpu.memory_space<vmem>>, vector<8x32xf32>
    tpu.vector_store %arg6[%c0_12, %c0_13], %29 {strides = array<i32>} : memref<8x32xf32, #tpu.memory_space<vmem>>, vector<8x32xf32>,
    return
  }
  func.func @transform_0(%arg0: i32) -> (i32, i32) {
    %c0_i32 = arith.constant 0 : i32
    %c0_i32_0 = arith.constant 0 : i32
    return %arg0, %c0_i32 : i32, i32
  }
  func.func @transform_1(%arg0: i32) -> (i32, i32) {
    %c0_i32 = arith.constant 0 : i32
    %c0_i32_0 = arith.constant 0 : i32
    %c0_i32_1 = arith.constant 0 : i32
    return %c0_i32, %c0_i32_0 : i32, i32
  }
  func.func @transform_2(%arg0: i32) -> (i32, i32) {
    %c0_i32 = arith.constant 0 : i32
    %c0_i32_0 = arith.constant 0 : i32
    %c0_i32_1 = arith.constant 0 : i32
    return %c0_i32, %c0_i32_0 : i32, i32
  }
  func.func @transform_3(%arg0: i32) -> (i32, i32) {
    %c0_i32 = arith.constant 0 : i32
    %c0_i32_0 = arith.constant 0 : i32
    %c0_i32_1 = arith.constant 0 : i32
    return %c0_i32, %c0_i32_0 : i32, i32
  }
  func.func @transform_4(%arg0: i32) -> (i32, i32) {
    %c0_i32 = arith.constant 0 : i32
    %c0_i32_0 = arith.constant 0 : i32
    %c0_i32_1 = arith.constant 0 : i32
    return %c0_i32, %c0_i32_0 : i32, i32
  }
  func.func @transform_5(%arg0: i32) -> (i32, i32) {
    %c0_i32 = arith.constant 0 : i32
    %c0_i32_0 = arith.constant 0 : i32
    return %arg0, %c0_i32 : i32, i32
  }
}

</mosaic_0001>

<bundles_post_ra>
// kernel: tpu_custom_call.1
= control target key start
LH: loop header
LB: loop body
LE: loop exit
PB: predicated region body
PF: predicated region fallthrough
CT: control target
= control target key end

     0   :  { %v325_v1 = vmov 0.0   ;;  %vm326_vm0 = vmmov 0   ;;  %s406_s0 = inlined_call_operand.vmem [shape: bf16[8,96], index: 0, kind: input, shape index: {}]   ;;  %s407_s1 = inlined_call_operand.vmem [shape: bf16[96,64], index: 1, kind: input, shape index: {}]   ;;  %s408_s2 = inlined_call_operand.vmem [shape: f32[1,64], index: 2, kind: input, shape index: {}]   ;;  %s409_s3 = inlined_call_operand.vmem [shape: bf16[32,64], index: 3, kind: input, shape index: {}]   ;;  %s410_s4 = inlined_call_operand.vmem [shape: f32[1,64], index: 4, kind: input, shape index: {}]   ;;  %s411_s5 = inlined_call_operand.hbm [shape: f32[8,32], index: 5, kind: output, shape index: {}]  }
   0x1   :  { %v281_v0 = vld [vmem:[%s407_s1] sm:$0xff]   ;;  %253 = vmatprep.subr.bf16.mxu0 %v325_v1  ;;  %269 = vmatprep.subr.bf16.mxu1 %v325_v1  ;;  %v282_v2 = vld [vmem:[%s407_s1 + $0x8] sm:$0xff]   ;;  %v283_v3 = vld [vmem:[%s407_s1 + $0x10] sm:$0xff]  }
   0x2   :  { %254 = vmatpush3.bf16.msra.mxu0 %v281_v0  ;;  %265 = vmatprep.mubr.msk.bf16.mxu0 %vm326_vm0, %v325_v1 }
   0x3   :  { %255 = vmatprep.subr.bf16.mxu0 %v325_v1  ;;  %273 = vmatprep.mubr.msk.bf16.mxu1 %vm326_vm0, %v325_v1 }
   0x6   :  { %256 = vmatpush3.bf16.msra.mxu0 %v282_v2 }
   0x7   :  { %257 = vmatprep.subr.bf16.mxu0 %v325_v1 }
   0x8   :  { %10 = vsyncpa [#allocation3], 0  ;;  %v284_v4 = vld [vmem:[%s407_s1 + $0x18] sm:$0xff]   ;;  %v285_v5 = vld [vmem:[%s407_s1 + $0x20] sm:$0xff]   ;;  %vm78_vm1 = vcmask 785408   ;;  %s327_s11 = smov 96  }
   0x9   :  { %v286_v6 = vld [vmem:[%s407_s1 + $0x28] sm:$0xff]   ;;  %v22_v7 = vld [vmem:[%s406_s0] sm:$0xf]  ;;  %vm158_vm2 = vcmask 261120  }
   0xa   :  { %258 = vmatpush3.bf16.msra.mxu0 %v283_v3  ;;  %v287_v8 = vld [vmem:[%s409_s3] sm:$0xff]   ;;  %v288_v17 = vld [vmem:[%s409_s3 + $0x8] sm:$0xff]   ;;  %s328_s3 = smov [#allocation2]  }
   0xb   :  { %259 = vmatprep.subr.bf16.mxu0 %v325_v1  ;;  %270 = vmatpush3.bf16.msra.mxu1 %v287_v8  ;;  %v229_v9 = vld [vmem:[%s408_s2] ss:$0 sm:$0xff]  ;;  %s221_s13 = sshll.u32 %s328_s3, 4  ;;  %s222_s13 = int_to_ptr.vmem [resolvable:$true] %s221_s13 }
   0xc   :  { %271 = vmatprep.subr.bf16.mxu1 %v325_v1  ;;  %v238_v24 = vld [vmem:[%s410_s4] ss:$0 sm:$0xff]  ;;  %s301_s4 = scalar_lea.vmem %s222_s13, 128  ;;  %p306_p1 = scmp.lt.s32.totalorder %s222_s13, %s222_s13 }
   0xd   :  { %p302_p0 = scmp.ne.s32.totalorder %s222_s13, %s301_s4  ;;  %p307_p2 = scmp.lt.s32.totalorder %s301_s4, %s301_s4 }
   0xe   :  { %260 = vmatpush3.bf16.msra.mxu0 %v284_v4 }
   0xf   :  { %261 = vmatprep.subr.bf16.mxu0 %v325_v1  ;;  %272 = vmatpush3.bf16.msra.mxu1 %v288_v17  ;;  %p308_p3 = por %p307_p2, %p306_p1 }
  0x11   :  { %p309_p4 = pnand %p308_p3, %p302_p0 }
  0x12   :  { %262 = vmatpush3.bf16.msra.mxu0 %v285_v5 }
  0x13   :  { %263 = vmatprep.subr.bf16.mxu0 %v325_v1 }
  0x16   :  { %264 = vmatpush3.bf16.msra.mxu0 %v286_v6 }
  0x19   :  { %266 = vmatmul.mubr.msk.bf16.vlgmr.msra.gmra.mrb[0].mxu0 %vm78_vm1, %v22_v7 }
  0xec   :  { %v116_v10 = vpop.f32.mrb[0].mxu0 }
  0xed   :  { %v117_v11 = vadd.f32 %v229_v9, %v116_v10  ;;  %v267_v12 = vpop.f32.mrb[1].mxu0 }
  0xee   :  { %v119_v13 = vpop.f32.mrb[2].mxu0 }
  0xef   :  { %v237_v14 = vmul.f32 -1.442695, %v117_v11  ;;  %v268_v15 = vpop.f32.mrb[3].mxu0 }
  0xf1   :  { %289 = vpow2.f32 %v237_v14 }
  0xfb   :  { %v290_v16 = vpop.eup %289 }
  0xfc   :  { %v126_v18 = vadd.f32 1.0, %v290_v16 }
  0xfe   :  { %291 = vrcp.f32 %v126_v18 }
  0xff   :  { %293 = vtanh.f32 %v117_v11 }
 0x108   :  { %v292_v19 = vpop.eup %291 }
 0x109   :  { %130 = vrot.lane.b32.xlu0 %v292_v19, %s327_s11  ;;  %v294_v20 = vpop.eup %293 }
 0x17b   :  { %v131_v21 = vpop.permute.xlu0 %130 }
 0x17c   :  { %v133_v22 = vmul.f32 %v294_v20, %v131_v21 }
 0x17e   :  { %v134_v23 = vpack.c.bf16 %v133_v22, %v133_v22 }
 0x180   :  { %274 = vmatmul.mubr.msk.bf16.vlgmr.msra.gmra.mrb[0].mxu1 %vm158_vm2, %v134_v23 }
 0x253   :  { %v196_v25 = vpop.f32.mrb[0].mxu1 }
 0x254   :  { %v197_v26 = vadd.f32 %v238_v24, %v196_v25  ;;  %v275_v27 = vpop.f32.mrb[1].mxu1 }
 0x255   :  { %v199_v28 = vpop.f32.mrb[2].mxu1 }
 0x256   :  { %v242_v29 = vmul.f32 -1.442695, %v197_v26  ;;  %v276_v30 = vpop.f32.mrb[3].mxu1 }
 0x258   :  { %295 = vpow2.f32 %v242_v29 }
 0x262   :  { %v296_v31 = vpop.eup %295 }
 0x263   :  { %v206_v32 = vadd.f32 1.0, %v296_v31 }
 0x265   :  { %297 = vrcp.f32 %v206_v32 }
 0x266   :  { %299 = vtanh.f32 %v197_v26 }
 0x26f   :  { %v298_v33 = vpop.eup %297 }
 0x270   :  { %210 = vrot.lane.b32.xlu0 %v298_v33, %s327_s11  ;;  %v300_v34 = vpop.eup %299 }
 0x2e2   :  { %v211_v35 = vpop.permute.xlu0 %210 }
 0x2e3   :  { %v213_v36 = vmul.f32 %v300_v34, %v211_v35 }
 0x2e5   :  { %214 = vst.msk [vmem:[#allocation2] sm:$0xff] %vm158_vm2, %v213_v36 }
 0x2e6   :  { %312 = shalt.err (!%p309_p4)
}
 0x2e7   :  { %s313_s16 = scalar_lea.hbm %s411_s5, 128 }
 0x2e8   :  { %p314_p5 = scmp.ne.s32.totalorder %s411_s5, %s313_s16  ;;  %p317_p6 = scmp.lt.u32.totalorder %s313_s16, %s411_s5 }
 0x2ea   :  { %p319_p7 = pnand %p317_p6, %p314_p5 }
 0x2ec   :  { %322 = shalt.err (!%p319_p7)
}
 0x2ed   :  { %224 = dma.vmem_to_hbm [thread:$0]  %s222_s13, 128, %s411_s5, [#allocation3]  }
 0x2ee   :  { %323 = dma.done.wait [#allocation3], 128  }
 0x2ef   :  { %324 = vsyncadd [#allocation3], 4294967168 }
 0x2f0   :  { %228 = vsyncpa [#allocation3], 1 }

</bundles_post_ra>
